<compile_context>
chip_gen: v5e
topology: v5e:2x2
jax: 0.10.0
libtpu: 0.0.40
codegen_flags: <defaults>
</compile_context>

<pallas_src>
import functools

import jax
import jax.numpy as jnp
from jax.experimental import pallas as pl
from jax.experimental.pallas import tpu as pltpu


# --------------------------------------------------------------------------- #
# Kernel body
# --------------------------------------------------------------------------- #
def _head_kernel(x_ref, w_ref, b_ref, o_ref, acc_ref, *, pool_type, inv_l,
                 mxu_dtype):
    # x_ref: (tb, tl, H) VMEM tile; w_ref: (H, D); b_ref: (1, D)
    # o_ref: (tb, D);   acc_ref: (tb, H) f32 scratch (persists across L steps)
    l = pl.program_id(1)
    n_l = pl.num_programs(1)

    if pool_type == "avg":
        @pl.when(l == 0)
        def _():
            acc_ref[...] = jnp.zeros_like(acc_ref)
        # Widen-on-accumulate: per-tile partial sum into the f32 accumulator.
        # (A v7x-only micro-opt would defer the cross-sublane reduce to the
        # epilogue via a (tb, 8, H) partial-sum scratch / MXU ones-dot; skipped
        # here -- the VPU/XLU have ample slack vs HBM on v5e/v6e.)
        acc_ref[...] += jnp.sum(x_ref[...], axis=1, dtype=jnp.float32)
    else:  # "max"
        @pl.when(l == 0)
        def _():
            acc_ref[...] = jnp.full_like(acc_ref, -jnp.inf)
        acc_ref[...] = jnp.maximum(
            acc_ref[...], jnp.max(x_ref[...], axis=1).astype(jnp.float32))

    @pl.when(l == n_l - 1)
    def _():
        pooled = acc_ref[...]
        if pool_type == "avg":
            pooled = pooled * inv_l            # sum -> mean (original L)
        if mxu_dtype != jnp.float32:
            # Feed the MXU in the weight's native dtype: avoids materializing
            # an f32 copy of (H, D) every batch tile and uses the native bf16
            # MXU path on v5e/v6e.
            pooled = pooled.astype(mxu_dtype)
        out = jnp.dot(pooled, w_ref[...], preferred_element_type=jnp.float32)
        o_ref[...] = (out + b_ref[...].astype(jnp.float32)).astype(o_ref.dtype)


# --------------------------------------------------------------------------- #
# Tiling helpers
# --------------------------------------------------------------------------- #
def _largest_aligned_divisor(total: int, max_tile: int, align: int):
    """Largest t <= max_tile with total % t == 0 and t % align == 0, else None."""
    t = (min(max_tile, total) // align) * align
    while t >= align:
        if total % t == 0:
            return t
        t -= align
    return None


def _tpu_geometry():
    """(vmem_bytes_per_core, num_tensorcores) with conservative fallbacks."""
    vmem = None
    n_cores = 0
    try:
        info = pltpu.get_tpu_info()
        vmem = int(getattr(info, "vmem_capacity_bytes", 0) or 0) or None
        for attr in ("num_tensorcores", "num_cores", "core_count"):
            n_cores = int(getattr(info, attr, 0) or 0)
            if n_cores:
                break
    except Exception:
        pass
    if vmem is None:
        vmem = 64 * 2**20                      # conservative (v7x per-TC)
    if n_cores <= 0:
        # Heuristic: 64 MiB/TC VMEM => v7x-class (2 TCs/chip), else 1 TC.
        n_cores = 2 if vmem <= 64 * 2**20 else 1
    return vmem, n_cores


def _pick_tb(B: int, cap: int, prefer_split: bool) -> int:
    """Batch tile: a multiple-of-8 divisor of B, or B itself (full axis).
    When prefer_split (>= 2 TensorCores, i.e. v7x) and B is large enough,
    force >= 2 batch tiles so the 'parallel' axis shards across both cores."""
    if prefer_split and B >= 16:
        t = _largest_aligned_divisor(B, min(cap, B // 2), 8)
        if t is not None:
            return t
    if B <= cap:
        return B
    t = _largest_aligned_divisor(B, cap, 8)
    return t if t is not None else B   # no aligned divisor: full axis (rare)


def _make_spec(shape, index_map, buffers: int = 2):
    """BlockSpec; when buffers != 2 request that pipelining depth (falls back
    to the default if this JAX version lacks pipeline_mode)."""
    if buffers != 2:
        try:
            return pl.BlockSpec(shape, index_map,
                                pipeline_mode=pl.Buffered(buffers))
        except TypeError:
            pass
    return pl.BlockSpec(shape, index_map)


# --------------------------------------------------------------------------- #
# Wrapper
# --------------------------------------------------------------------------- #
def head_forward(x, w, b, *, pool_type: str = "avg", tb: int | None = None,
                 tl: int | None = None, x_tile_bytes: int | None = None,
                 x_buffers: int = 2):
    """Pallas implementation of Head.forward (stop_gradient=False).

    x: (B, L, H);  w: (H, D)  (== PyTorch proj.weight.T);  b: (D,)
    returns: (B, D) in x.dtype
    """
    B, L, H = x.shape
    H2, D = w.shape
    assert H2 == H, "weight must be laid out as (H, D) == proj.weight.T"
    if pool_type not in ("avg", "max"):
        # TODO(synk): 'attentive' (AttentivePool) and 'none' (per-token proj)
        # pool types are not implemented in this kernel.
        raise ValueError(f"unsupported pool_type: {pool_type}")
    b2 = b.reshape(1, D)

    x_itemsize = jnp.dtype(x.dtype).itemsize
    out_itemsize = x_itemsize
    vmem_cap, n_cores = _tpu_geometry()
    small_vmem = vmem_cap <= 64 * 2**20                    # v7x-class
    cap_budget = (48 if small_vmem else 100) * 2**20       # scoped-VMEM budget

    # --- batch tile ---------------------------------------------------------
    tb_cap = 128 if small_vmem else 256
    if tb is None:
        tb = _pick_tb(B, tb_cap, prefer_split=(n_cores >= 2))

    w_bytes = H * D * jnp.dtype(w.dtype).itemsize
    b_bytes = D * jnp.dtype(b.dtype).itemsize
    resident_bytes = (w_bytes + b_bytes            # single-buffered constants
                      + 2 * tb * D * out_itemsize  # double-buffered out block
                      + tb * H * 4)                # f32 accumulator scratch

    # --- sequence (reduction) tile ------------------------------------------
    # Sub-32-bit dtypes pack along sublanes: align tl to the packed count.
    align_l = {4: 8, 2: 16, 1: 32}.get(x_itemsize, 8)
    if x_tile_bytes is None:
        x_tile_bytes = (14 if small_vmem else 28) * 2**20
    x_tile_bytes = max(2 * 2**20,
                       min(int(x_tile_bytes),
                           (cap_budget - resident_bytes) // max(1, x_buffers)))

    pad = 0
    if tl is None:
        max_tl = max(align_l, x_tile_bytes // max(1, tb * H * x_itemsize))
        if L <= max_tl:
            tl = L                                    # full axis, no alignment needed
        else:
            t = _largest_aligned_divisor(L, max_tl, align_l)
            if t is not None:
                tl = t
            else:
                # No aligned divisor: cap the tile and pad L up to a multiple,
                # instead of silently falling back to one giant tile.
                tl = max(align_l, (max_tl // align_l) * align_l)
                pad = (-L) % tl
    else:
        pad = (-L) % tl

    if pad:
        # Zero padding is exact for 'avg' (sum unchanged, mean uses 1/L);
        # -inf padding is exact for 'max'.
        pad_val = 0.0 if pool_type == "avg" else float("-inf")
        x = jnp.pad(x, ((0, 0), (0, pad), (0, 0)), constant_values=pad_val)
    Lp = L + pad

    grid = (pl.cdiv(B, tb), Lp // tl)

    # VMEM budget estimate -> scoped limit (generation-aware cap).
    x_block_bytes = tb * tl * H * x_itemsize
    est = x_buffers * x_block_bytes + resident_bytes
    vmem_limit = int(min(cap_budget, max(32 * 2**20, int(1.3 * est))))

    cost = pl.CostEstimate(
        flops=B * L * H + 2 * B * H * D,
        transcendentals=0,
        bytes_accessed=(B * Lp * H * x_itemsize + w_bytes + b_bytes
                        + B * D * out_itemsize),
    )

    kernel = functools.partial(_head_kernel, pool_type=pool_type,
                               inv_l=1.0 / float(L),
                               mxu_dtype=jnp.dtype(w.dtype))

    x_spec = _make_spec((tb, tl, H), lambda bi, li: (bi, li, 0),
                        buffers=x_buffers)
    w_spec = _make_spec((H, D), lambda bi, li: (0, 0), buffers=1)   # resident
    b_spec = _make_spec((1, D), lambda bi, li: (0, 0), buffers=1)   # resident

    return pl.pallas_call(
        kernel,
        out_shape=jax.ShapeDtypeStruct((B, D), x.dtype),
        grid_spec=pltpu.PrefetchScalarGridSpec(
            num_scalar_prefetch=0,
            grid=grid,
            in_specs=[x_spec, w_spec, b_spec],
            out_specs=pl.BlockSpec((tb, D), lambda bi, li: (bi, 0)),
            scratch_shapes=[pltpu.VMEM((tb, H), jnp.float32)],
        ),
        compiler_params=pltpu.CompilerParams(
            dimension_semantics=("parallel", "arbitrary"),
            vmem_limit_bytes=vmem_limit,
        ),
        cost_estimate=cost,
    )(x, w, b2)


# --------------------------------------------------------------------------- #
# Self-test
# --------------------------------------------------------------------------- #
if __name__ == "__main__":
    # Small shapes consistent with the module: batch=2, seq=16, hidden=32, out_dim=32.
    B, L, H, D = 2, 16, 32, 32

    key = jax.random.PRNGKey(0)
    kx, kw, kb = jax.random.split(key, 3)

    x = jax.random.normal(kx, (B, L, H), dtype=jnp.float32)
    # Deterministic "nn.Linear(H, D)" params (synthetic, PyTorch-style uniform bound).
    bound = 1.0 / (H ** 0.5)
    w = jax.random.uniform(kw, (H, D), dtype=jnp.float32, minval=-bound, maxval=bound)
    b = jax.random.uniform(kb, (D,), dtype=jnp.float32, minval=-bound, maxval=bound)

    # Multi-step reduction path (tl=8 -> 2 L steps, accumulator over grid axis 1).
    out = jax.block_until_ready(head_forward(x, w, b, pool_type="avg", tl=8))
    ref = jnp.mean(x, axis=1) @ w + b
    assert out.shape == (B, D)
    assert jnp.allclose(out, ref, atol=1e-5, rtol=1e-5), "avg-pool mismatch"

    out_max = jax.block_until_ready(head_forward(x, w, b, pool_type="max", tl=8))
    ref_max = jnp.max(x, axis=1) @ w + b
    assert jnp.allclose(out_max, ref_max, atol=1e-5, rtol=1e-5), "max-pool mismatch"

    # Default (generation-aware) tiling path: single L tile.
    out_d = jax.block_until_ready(head_forward(x, w, b, pool_type="avg"))
    assert jnp.allclose(out_d, ref, atol=1e-5, rtol=1e-5), "default-tiling mismatch"

    # Padded-tail path: L=12 with tl=8 pads L to 16 (zeros for avg, -inf for max).
    x12 = jax.random.normal(kx, (B, 12, H), dtype=jnp.float32)
    out_p = jax.block_until_ready(head_forward(x12, w, b, pool_type="avg", tl=8))
    ref_p = jnp.mean(x12, axis=1) @ w + b
    assert jnp.allclose(out_p, ref_p, atol=1e-5, rtol=1e-5), "padded avg mismatch"
    out_pm = jax.block_until_ready(head_forward(x12, w, b, pool_type="max", tl=8))
    ref_pm = jnp.max(x12, axis=1) @ w + b
    assert jnp.allclose(out_pm, ref_pm, atol=1e-5, rtol=1e-5), "padded max mismatch"

    print("KERNEL_OK")
</pallas_src>

<mosaic_0001>
module attributes {stable_mosaic.version = 11 : i64} {
  func.func @_head_kernel(%arg0: i32, %arg1: i32, %arg2: memref<2x8x32xf32, #tpu.memory_space<vmem>>, %arg3: memref<32x32xf32, #tpu.memory_space<vmem>>, %arg4: memref<1x32xf32, #tpu.memory_space<vmem>>, %arg5: memref<2x32xf32, #tpu.memory_space<vmem>>, %arg6: memref<2x32xf32, #tpu.memory_space<vmem>>) attributes {dimension_semantics = [#tpu.dimension_semantics<parallel>, #tpu.dimension_semantics<arbitrary>], iteration_bounds = array<i64: 1, 2>, scalar_prefetch = 0 : i64, scratch_operands = 1 : i64, tpu.core_type = #tpu.core_type<tc>, window_params = [{transform_indices = @transform_0, window_bounds = array<i64: 2, 8, 32>}, {pipeline_mode = #tpu.pipeline_mode<synchronous>, transform_indices = @transform_1, window_bounds = array<i64: 32, 32>}, {pipeline_mode = #tpu.pipeline_mode<synchronous>, transform_indices = @transform_2, window_bounds = array<i64: 1, 32>}, {transform_indices = @transform_3, window_bounds = array<i64: 2, 32>}]} {
    %c0_i32 = arith.constant 0 : i32
    %0 = arith.cmpi eq, %arg1, %c0_i32 : i32
    %1 = arith.extui %0 : i1 to i32
    %c0_i32_0 = arith.constant 0 : i32
    %2 = arith.cmpi ne, %1, %c0_i32_0 : i32
    scf.if %2 {
      %cst_8 = arith.constant 0.000000e+00 : f32
      %11 = vector.broadcast %cst_8 : f32 to vector<2x32xf32>
      %c0_9 = arith.constant 0 : index
      %c0_10 = arith.constant 0 : index
      %12 = vector.load %arg6[%c0_9, %c0_10] : memref<2x32xf32, #tpu.memory_space<vmem>>, vector<2x32xf32>
      tpu.vector_store %arg6[%c0_9, %c0_10], %11 {strides = array<i32>} : memref<2x32xf32, #tpu.memory_space<vmem>>, vector<2x32xf32>,
    } else {
    }
    %c0 = arith.constant 0 : index
    %c0_1 = arith.constant 0 : index
    %3 = vector.load %arg6[%c0, %c0_1] : memref<2x32xf32, #tpu.memory_space<vmem>>, vector<2x32xf32>
    %c0_2 = arith.constant 0 : index
    %c0_3 = arith.constant 0 : index
    %c0_4 = arith.constant 0 : index
    %4 = vector.load %arg2[%c0_2, %c0_3, %c0_4] : memref<2x8x32xf32, #tpu.memory_space<vmem>>, vector<2x8x32xf32>
    %cst = arith.constant dense<0.000000e+00> : vector<2x32xf32>
    %5 = vector.multi_reduction <add>, %4, %cst [1] : vector<2x8x32xf32> to vector<2x32xf32>
    %6 = arith.addf %3, %5 : vector<2x32xf32>
    %c0_5 = arith.constant 0 : index
    %c0_6 = arith.constant 0 : index
    %7 = vector.load %arg6[%c0_5, %c0_6] : memref<2x32xf32, #tpu.memory_space<vmem>>, vector<2x32xf32>
    tpu.vector_store %arg6[%c0_5, %c0_6], %6 {strides = array<i32>} : memref<2x32xf32, #tpu.memory_space<vmem>>, vector<2x32xf32>,
    %c1_i32 = arith.constant 1 : i32
    %8 = arith.cmpi eq, %arg1, %c1_i32 : i32
    %9 = arith.extui %8 : i1 to i32
    %c0_i32_7 = arith.constant 0 : i32
    %10 = arith.cmpi ne, %9, %c0_i32_7 : i32
    scf.if %10 {
      %c0_8 = arith.constant 0 : index
      %c0_9 = arith.constant 0 : index
      %11 = vector.load %arg6[%c0_8, %c0_9] : memref<2x32xf32, #tpu.memory_space<vmem>>, vector<2x32xf32>
      %cst_10 = arith.constant 6.250000e-02 : f32
      %12 = vector.broadcast %cst_10 : f32 to vector<2x32xf32>
      %13 = arith.mulf %11, %12 : vector<2x32xf32>
      %c0_11 = arith.constant 0 : index
      %c0_12 = arith.constant 0 : index
      %14 = vector.load %arg3[%c0_11, %c0_12] : memref<32x32xf32, #tpu.memory_space<vmem>>, vector<32x32xf32>
      %cst_13 = arith.constant dense<0.000000e+00> : vector<2x32xf32>
      %15 = tpu.matmul %13, %14, %cst_13 {dimension_numbers = #tpu.dot_dimension_numbers<[1], [0], [0], [1], [0, 0, 1, 1], [], []>} : vector<2x32xf32>, vector<32x32xf32>, vector<2x32xf32> -> vector<2x32xf32>
      %c0_14 = arith.constant 0 : index
      %c0_15 = arith.constant 0 : index
      %16 = vector.load %arg4[%c0_14, %c0_15] : memref<1x32xf32, #tpu.memory_space<vmem>>, vector<1x32xf32>
      %17 = vector.broadcast %16 : vector<1x32xf32> to vector<2x32xf32>
      %18 = arith.addf %15, %17 : vector<2x32xf32>
      %c0_16 = arith.constant 0 : index
      %c0_17 = arith.constant 0 : index
      %19 = vector.load %arg5[%c0_16, %c0_17] : memref<2x32xf32, #tpu.memory_space<vmem>>, vector<2x32xf32>
      tpu.vector_store %arg5[%c0_16, %c0_17], %18 {strides = array<i32>} : memref<2x32xf32, #tpu.memory_space<vmem>>, vector<2x32xf32>,
    } else {
    }
    return
  }
  func.func @transform_0(%arg0: i32, %arg1: i32) -> (i32, i32, i32) {
    %c0_i32 = arith.constant 0 : i32
    %c0_i32_0 = arith.constant 0 : i32
    return %arg0, %arg1, %c0_i32 : i32, i32, i32
  }
  func.func @transform_1(%arg0: i32, %arg1: i32) -> (i32, i32) {
    %c0_i32 = arith.constant 0 : i32
    %c0_i32_0 = arith.constant 0 : i32
    %c0_i32_1 = arith.constant 0 : i32
    return %c0_i32, %c0_i32_0 : i32, i32
  }
  func.func @transform_2(%arg0: i32, %arg1: i32) -> (i32, i32) {
    %c0_i32 = arith.constant 0 : i32
    %c0_i32_0 = arith.constant 0 : i32
    %c0_i32_1 = arith.constant 0 : i32
    return %c0_i32, %c0_i32_0 : i32, i32
  }
  func.func @transform_3(%arg0: i32, %arg1: i32) -> (i32, i32) {
    %c0_i32 = arith.constant 0 : i32
    %c0_i32_0 = arith.constant 0 : i32
    return %arg0, %c0_i32 : i32, i32
  }
}

</mosaic_0001>

<bundles_post_ra>
// kernel: tpu_custom_call.1
= control target key start
LH: loop header
LB: loop body
LE: loop exit
PB: predicated region body
PF: predicated region fallthrough
CT: control target
= control target key end

     0   :  { %8 = vsyncpa [#allocation4], 0  ;;  %s770_s0 = inlined_call_operand.hbm [shape: f32[2,16,32], index: 0, kind: input, shape index: {}]   ;;  %s771_s1 = inlined_call_operand.hbm [shape: f32[32,32], index: 1, kind: input, shape index: {}]   ;;  %s772_s2 = inlined_call_operand.vmem [shape: f32[1,32], index: 2, kind: input, shape index: {}]   ;;  %s773_s3 = inlined_call_operand.hbm [shape: f32[2,32], index: 3, kind: output, shape index: {}]  }
   0x1   :  { %10 = vsyncpa [#allocation4 + $0x1], 0 }
   0x2   :  { %11 = vsyncpa [#allocation7], 0 }
   0x3   :  { %12 = vsyncpa [#allocation5], 0  ;;  %s640_s12 = smov 0   ;;  %s642_s13 = smov 0  }
   0x4   :  { %s644_s14 = smov 0   ;;  %s646_s15 = smov 0  }
   0x5   :  { %s648_s16 = smov 0   ;;  %s650_s17 = smov 0  }
   0x6 LB: > { %s372_s18 = sadd.s32 4294967295, %s612_s17   ;;  %p52_p0 = scmp.ne.s32.totalorder %s596_s13, %s592_s12  ;;  %s612_s17 = sphi %s650_s17, %s18_s17   ;;  %s608_s16 = sphi %s648_s16, %s782_s16   ;;  %s604_s15 = sphi %s646_s15, %s781_s15   ;;  %s600_s14 = sphi %s644_s14, %s780_s14   ;;  %s596_s13 = sphi %s642_s13, %s779_s13   ;;  %s592_s12 = sphi %s640_s12, %s778_s12  }
   0x7   : > { %p672_p1 = scmp.eq.s32.totalorder %s372_s18, 0  ;;  %p373_p2 = scmp.ge.s32.totalorder %s612_s17, 1 }
   0x8   : > { %p131_p3 = scmp.lt.s32.totalorder %s612_s17, 3  ;;  %s142_s23 = sshll.u32 %s771_s1, 4  ;;  %s143_s23 = int_to_ptr.hbm [resolvable:$true] %s142_s23 }
   0x9   : > { %p680_p4 = por %p672_p1, %p52_p0  ;;  %s614_s25 = smov [#allocation6]  }
   0xa   : > { %p687_p5 = pnand %p373_p2, %p131_p3  ;;  %s144_s26 = sshll.u32 %s614_s25, 4  ;;  %s145_s26 = int_to_ptr.vmem [resolvable:$true] %s144_s26 }
   0xb   : > { %s615_s27 = smov 128   ;;  %s616_s28 = smov 8  }
   0xc   : > { %p398_p6 = pneg %p687_p5  ;;  %s27_s29 = sadd.s32 1, %s608_s16 }
   0xd   : > { %p28_p8 = scmp.ge.s32.totalorder %s27_s29, 2  ;;  %s39_s30 = sadd.s32 1, %s600_s14 }
   0xe   : > { %p399_p7 = pnand %p398_p6, %p672_p1  ;;  %p46_p9 = scmp.ne.s32.totalorder %s600_s14, %s596_s13 }
   0xf   : > { %p47_p10 = scmp.eq.s32.totalorder %s612_s17, 0  ;;  %s784_s29 = smov (%p28_p8, %s27_s29), 0 }
  0x10   : > { %401 = dma.hbm_to_vmem [thread:$0]  (!%p399_p7), %s143_s23, 512, %s145_s26, [#allocation7], %s615_s27, %s615_s27, %s616_s28  }
  0x11   : > { %p705_p11 = por %p47_p10, %p46_p9  ;;  %p407_p12 = scmp.lt.s32.totalorder %s612_s17, 2 }
  0x12   : > { %s35_s5 = ssub.s32 %s608_s16, %s784_s29  ;;  %s161_s6 = sand.u32 1, %s600_s14  }
  0x13   : > { %p37_p13 = scmp.eq.s32.totalorder %s35_s5, 0  ;;  %s376_s7 = sshll.u32 %s161_s6, 4 }
  0x14   : > { %s377_s8 = sshll.u32 %s608_s16, 3  ;;  %s165_s22 = scalar_lea.vmem [#allocation3], %s376_s7 }
  0x15   : > { %s715_s9 = scalar_select %p37_p13, %s600_s14, %s39_s30  }
  0x16   : > { %s172_s12 = scalar_lea.hbm %s770_s0, %s377_s8  ;;  %s175_s23 = sshll.u32 %s165_s22, 4  ;;  %s176_s23 = int_to_ptr.vmem [resolvable:$true] %s175_s23 }
  0x17   : > { %s173_s21 = sshll.u32 %s172_s12, 4  ;;  %p403_p0 = pnand %p407_p12, %p705_p11  ;;  %s174_s21 = int_to_ptr.hbm [resolvable:$true] %s173_s21 }
  0x18   : > { %s162_s25 = scalar_lea.sflag [#allocation4], %s161_s6  ;;  %s617_s26 = smov 256  }
  0x19   : > { %405 = dma.hbm_to_vmem [thread:$0]  (!%p403_p0), %s174_s21, 256, %s176_s23, %s162_s25, %s617_s26, %s615_s27, %s616_s28  }
  0x1a   : > { %187 = sbr.rel (%p687_p5) target bundleno = 205 (0xcd), region = 32  ;;  %s189_s30 = sand.u32 (!%p687_p5), 1, %s596_s13  }
  0x1b   : > { %s379_s5 = sshll.u32 (!%p687_p5), %s189_s30, 4  ;;  %s190_s8 = scalar_lea.sflag (!%p687_p5), [#allocation4], %s189_s30 }
  0x1c   : > { %s193_s7 = scalar_lea.vmem (!%p687_p5), [#allocation3], %s379_s5 }
  0x1f   : > { %579 = dma.done.wait (%p680_p4), %s190_s8, 256  }
  0x20   : > { %581 = vsyncadd (%p680_p4), %s190_s8, 4294967040 }
  0x21   : > { %583 = dma.done.wait (%p672_p1), [#allocation7], 512  }
  0x22   : > { %585 = vsyncadd (%p672_p1), [#allocation7], 4294966784  ;;  %p381_p2 = scmp.ne.s32.totalorder %s604_s15, 0 }
  0x24   : > { %221 = sbr.rel (%p381_p2) target bundleno = 43 (0x2b), region = 44 }
  0x29   : > { %vm222_vm0 = vcmask 254976   ;;  %v618_v0 = vmov 0.0  }
  0x2a   : > { %223 = vst.msk [vmem:[#allocation2] sm:$0x3] %vm222_vm0, %v618_v0 }
  0x2b PF: > { %v225_v1 = vld [vmem:[%s193_s7] sm:$0xff]  ;;  %v226_v2 = vld [vmem:[%s193_s7 + $0x8] sm:$0xff]  ;;  %vm227_vm1 = vcmask 261120   ;;  %vm244_vm2 = vcmask 1041409   ;;  %vm248_vm3 = vcmask 254976   ;;  %p382_p1 = scmp.ne.s32.totalorder %s604_s15, 1 }
  0x2c   : > { %v228_v3 = vsel %vm227_vm1, %v225_v1, 0.0  ;;  %v235_v4 = vsel %vm227_vm1, %v226_v2, 0.0 }
  0x2d   : > { %v229_v5 = vrot.slane %v228_v3, 4  ;;  %v236_v6 = vrot.slane %v235_v4, 4 }
  0x2f   : > { %v230_v7 = vadd.f32 %v229_v5, %v228_v3  ;;  %v237_v8 = vadd.f32 %v236_v6, %v235_v4 }
  0x31   : > { %v231_v9 = vrot.slane %v230_v7, 2  ;;  %v238_v10 = vrot.slane %v237_v8, 2  ;;  %v224_v15 = vld [vmem:[#allocation2] sm:$0x3] }
  0x33   : > { %v232_v11 = vadd.f32 %v231_v9, %v230_v7  ;;  %v239_v12 = vadd.f32 %v238_v10, %v237_v8 }
  0x35   : > { %v233_v13 = vrot.slane %v232_v11, 1  ;;  %v240_v14 = vrot.slane %v239_v12, 1 }
  0x37   : > { %v234_v16 = vadd.f32 %v233_v13, %v232_v11  ;;  %v241_v17 = vadd.f32 %v240_v14, %v239_v12 }
  0x38   : > { %253 = sbr.rel (%p382_p1) target bundleno = 199 (0xc7), region = 48 }
  0x39   : > { %v245_v18 = vsel %vm244_vm2, %v241_v17, %v234_v16 }
  0x3a   : > { %v247_v19 = vadd.f32 %v245_v18, %v224_v15 }
  0x3c   : > { %249 = vst.msk [vmem:[#allocation2] sm:$0x3] %vm248_vm3, %v247_v19 }
  0x3d   : > { %v259_v20 = vld [vmem:[#allocation6 + $0x18] sm:$0xff]  ;;  %v258_v21 = vld [vmem:[#allocation6 + $0x10] sm:$0xff]  ;;  %v257_v23 = vld [vmem:[#allocation6 + $0x8] sm:$0xff] }
  0x3e   : > { %279 = vmatpush.msra.mxu0 %v259_v20  ;;  %v256_v24 = vld [vmem:[#allocation6] sm:$0xff]  ;;  %v465_v26 = vld [vmem:[%s772_s2] ss:$0 sm:$0xff] }
  0x40   : > { %280 = vmatpush.msra.mxu0 %v258_v21 }
  0x42   : > { %281 = vmatpush.msra.mxu0 %v257_v23 }
  0x43   : > { %v254_v22 = vld [vmem:[#allocation2] sm:$0x3] }
  0x44   : > { %v255_v25 = vmul.f32 0.0625, %v254_v22  ;;  %282 = vmatpush.msra.mxu0 %v256_v24 }
  0x46   : > { %383 = vmatmul.msk.f32.vlgmr.msra.gmra.mxu0 %vm227_vm1, %v255_v25 }
  0xc3   : > { %v284_v27 = vpop.f32.mrf.mxu0 }
  0xc4   : > { %v285_v28 = vadd.f32 %v465_v26, %v284_v27 }
  0xc6   : > { %287 = vst.msk [vmem:[#allocation8] sm:$0x3] %vm248_vm3, %v285_v28 }
  0xc7 PF: > { %p409_p3 = scmp.eq.s32.totalorder %s372_s18, 1  ;;  %s298_s27 = sshll.u32 %s773_s3, 4  ;;  %s299_s27 = int_to_ptr.hbm [resolvable:$true] %s298_s27 }
  0xc8   : > { %s619_s28 = smov [#allocation8]  }
  0xc9   : > { %s296_s4 = sshll.u32 %s619_s28, 4  ;;  %s297_s4 = int_to_ptr.vmem [resolvable:$true] %s296_s4 }
  0xca   : > { %395 = dma.vmem_to_hbm [thread:$0]  (%p409_p3), %s297_s4, 32, %s299_s27, [#allocation5]  }
  0xcb   : > { %587 = dma.done.wait (%p409_p3), [#allocation5], 32  }
  0xcc   : > { %589 = vsyncadd (%p409_p3), [#allocation5], 4294967264 }
  0xcd PF: > { %s18_s17 = sadd.s32 1, %s612_s17   ;;  %s778_s12 = smov %s596_s13 }
  0xce   : > { %p15_p4 = scmp.ge.s32.totalorder %s18_s17, 4   ;;  %s779_s13 = smov %s600_s14 }
  0xcf   : > { %s780_s14 = smov %s715_s9  ;;  %s781_s15 = smov %s608_s16 }
  0xd0   : > { %s782_s16 = smov %s784_s29  ;;  %17 = sbr.rel (!%p15_p4) target bundleno = 6 (0x6), region = 82 }
  0xd5   :  { %312 = vsyncpa [#allocation4], 1 }
  0xd6   :  { %314 = vsyncpa [#allocation4 + $0x1], 1 }
  0xd7   :  { %315 = vsyncpa [#allocation7], 1 }
  0xd8   :  { %316 = vsyncpa [#allocation5], 1 }
  0xd9   :  { %318 = vsyncpa [#allocation5 + $0x1], 1 }

</bundles_post_ra>
